<compile_context>
chip_gen: v5e
topology: v5e:2x2
jax: 0.10.0
libtpu: 0.0.40
codegen_flags: <defaults>
</compile_context>

<pallas_src>
import functools
import math

import jax
import jax.numpy as jnp
from jax import lax
from jax.experimental import pallas as pl
from jax.experimental.pallas import tpu as pltpu

LANE = 128
SUBLANE = 8
_MIB = 1024 * 1024


def _round_up(x, m):
    return ((x + m - 1) // m) * m


def _vmem_budget():
    """Returns (vmem_limit_bytes, small_vmem?) — generation aware."""
    phys = 128 * _MIB
    try:
        info = pltpu.get_tpu_info()
        phys = int(getattr(info, "vmem_capacity_bytes", phys))
    except Exception:
        pass
    if phys <= 64 * _MIB:          # v7x-class: 64 MiB physical per TC — leave headroom
        return 48 * _MIB, True
    return 96 * _MIB, False        # v5e / v6e: 128 MiB physical


def _is_v5():
    try:
        return "v5" in jax.devices()[0].device_kind.lower()
    except Exception:
        return False


# ---------------------------------------------------------------------------
# Kernel 1: tiled fused QKV projection.
#   grid = (q tiles, 3 feature blocks [q|k|v], d_in tiles); f32 accumulator.
# ---------------------------------------------------------------------------
def _qkv_proj_kernel(x_ref, w_ref, o_ref, acc_ref):
    @pl.when(pl.program_id(2) == 0)
    def _():
        acc_ref[...] = jnp.zeros_like(acc_ref)

    acc_ref[...] += jnp.dot(x_ref[...], w_ref[...],
                            preferred_element_type=jnp.float32)

    @pl.when(pl.program_id(2) == pl.num_programs(2) - 1)
    def _():
        o_ref[...] = acc_ref[...].astype(o_ref.dtype)


# ---------------------------------------------------------------------------
# Kernel 2a: streaming flash attention (online softmax over the kv grid axis).
# ---------------------------------------------------------------------------
def _flash_stream_kernel(q_ref, k_ref, v_ref, o_ref, m_sc, l_sc, acc_sc, *,
                         kv_len, tk, mask_kv):
    kv = pl.program_id(1)

    @pl.when(kv == 0)
    def _():
        m_sc[...] = jnp.full_like(m_sc, -1e30)
        l_sc[...] = jnp.zeros_like(l_sc)
        acc_sc[...] = jnp.zeros_like(acc_sc)

    # Contract last axes of q and k: no explicit k transpose through the XLU.
    s = lax.dot_general(q_ref[...], k_ref[...], (((1,), (1,)), ((), ())),
                        preferred_element_type=jnp.float32)          # (tq, tk)

    if mask_kv:   # static bool — only traced when the sequence was padded
        kv_pos = kv * tk + lax.broadcasted_iota(jnp.int32, s.shape, 1)
        s = jnp.where(kv_pos < kv_len, s, jnp.float32(-1e30))

    m_prev = m_sc[...]
    m_new = jnp.maximum(m_prev, jnp.max(s, axis=-1, keepdims=True))
    alpha = jnp.exp(m_prev - m_new)
    # TODO(synk): if xprof shows the EUP (exp) slot binding on v6e/v7x, compute
    # p in bf16 here (EUP has bf16 on those gens; keep f32 on v5e).
    p = jnp.exp(s - m_new)

    l_sc[...] = alpha * l_sc[...] + jnp.sum(p, axis=-1, keepdims=True)
    acc_sc[...] = alpha * acc_sc[...] + jnp.dot(
        p.astype(v_ref.dtype), v_ref[...], preferred_element_type=jnp.float32)
    m_sc[...] = m_new

    @pl.when(kv == pl.num_programs(1) - 1)
    def _():
        o_ref[...] = (acc_sc[...] *
                      pl.reciprocal(l_sc[...], approx=True)).astype(o_ref.dtype)


# ---------------------------------------------------------------------------
# Kernel 2b: KV-resident fast path. K/V stay in VMEM (constant index_map), the
# kv loop runs inside the kernel — no HBM re-streaming per q tile.
# ---------------------------------------------------------------------------
def _flash_resident_kernel(q_ref, k_ref, v_ref, o_ref, *, kv_len, tk, mask_kv,
                           n_chunks):
    q = q_ref[...]
    tq, dp = q.shape

    def body(c, carry):
        m_prev, l_prev, acc_prev = carry
        start = pl.multiple_of(c * tk, tk)
        k_blk = k_ref[pl.ds(start, tk), :]
        v_blk = v_ref[pl.ds(start, tk), :]
        s = lax.dot_general(q, k_blk, (((1,), (1,)), ((), ())),
                            preferred_element_type=jnp.float32)      # (tq, tk)
        if mask_kv:
            kv_pos = c * tk + lax.broadcasted_iota(jnp.int32, s.shape, 1)
            s = jnp.where(kv_pos < kv_len, s, jnp.float32(-1e30))
        m_new = jnp.maximum(m_prev, jnp.max(s, axis=-1, keepdims=True))
        alpha = jnp.exp(m_prev - m_new)
        p = jnp.exp(s - m_new)
        l_new = alpha * l_prev + jnp.sum(p, axis=-1, keepdims=True)
        acc_new = alpha * acc_prev + jnp.dot(
            p.astype(v_blk.dtype), v_blk, preferred_element_type=jnp.float32)
        return m_new, l_new, acc_new

    init = (jnp.full((tq, 1), -1e30, jnp.float32),
            jnp.zeros((tq, 1), jnp.float32),
            jnp.zeros((tq, dp), jnp.float32))
    _, l_f, acc_f = lax.fori_loop(0, n_chunks, body, init)
    o_ref[...] = (acc_f * pl.reciprocal(l_f, approx=True)).astype(o_ref.dtype)


# ---------------------------------------------------------------------------
# Wrapper
# ---------------------------------------------------------------------------
def self_attention_v2(x, w_query, w_key, w_value, *, tile=512,
                      compute_dtype=None, kv_resident_bytes=None):
    """x: (T, d_in); w_*: (d_out, d_in) in PyTorch nn.Linear convention."""
    T, d_in = x.shape
    d_out = w_query.shape[0]
    out_dtype = x.dtype

    # dtype policy: bf16 matmul inputs when x is f32; accumulation stays f32.
    if compute_dtype is None:
        cdt = jnp.bfloat16 if x.dtype == jnp.float32 else x.dtype
    else:
        cdt = jnp.dtype(compute_dtype)
    itemsize = jnp.dtype(cdt).itemsize

    vmem_limit, small_vmem = _vmem_budget()
    if kv_resident_bytes is None:
        kv_resident_bytes = (12 if small_vmem else 32) * _MIB

    dp = _round_up(d_out, LANE)                     # lane-dense feature dim

    # --- tile sizes (tq == tk so a kv tile can never be fully padded) --------
    tile = _round_up(max(int(tile), SUBLANE), SUBLANE)
    tq = min(tile, _round_up(T, SUBLANE))
    # v7x megacore: ensure the "parallel" q axis has >= 2 tiles when possible.
    if T > SUBLANE and _round_up(T, tq) // tq < 2:
        tq = _round_up(-(-T // 2), SUBLANE)
    tq = max(SUBLANE, tq)
    tk = tq
    t_pad = _round_up(T, tq)
    mask_kv = t_pad != T
    nq = t_pad // tq
    nkv = t_pad // tk

    # --- contraction tiling for the projection --------------------------------
    if d_in <= 1024:
        kc, d_in_pad = d_in, d_in
    else:
        kc = 512
        d_in_pad = _round_up(d_in, kc)
    nk = d_in_pad // kc

    # --- layout plumbing (one-off, wrapper side) -------------------------------
    x_p = x
    if t_pad != T or d_in_pad != d_in:
        x_p = jnp.pad(x, ((0, t_pad - T), (0, d_in_pad - d_in)))
    x_p = x_p.astype(cdt)

    scale = 1.0 / math.sqrt(d_out)

    def _prep(w, s=None):   # (d_out, d_in) -> (d_in_pad, dp), scale folded in
        wt = (w * s).T if s is not None else w.T
        return jnp.pad(wt, ((0, d_in_pad - d_in), (0, dp - d_out))).astype(cdt)

    # 1/sqrt(d_out) folded into W_q columns — no per-step multiply in the kernel.
    w_qkv = jnp.concatenate(
        [_prep(w_query, scale), _prep(w_key), _prep(w_value)], axis=1)

    # ---- kernel 1: tiled fused QKV projection -> (t_pad, 3*dp) slab -----------
    proj_cost = pl.CostEstimate(
        flops=int(2 * t_pad * d_in_pad * 3 * dp),
        transcendentals=0,
        bytes_accessed=int(itemsize * (t_pad * d_in_pad + d_in_pad * 3 * dp
                                       + t_pad * 3 * dp)))
    qkv = pl.pallas_call(
        _qkv_proj_kernel,
        out_shape=jax.ShapeDtypeStruct((t_pad, 3 * dp), cdt),
        grid=(nq, 3, nk),
        in_specs=[
            pl.BlockSpec((tq, kc), lambda i, n, k: (i, k)),
            pl.BlockSpec((kc, dp), lambda i, n, k: (k, n)),
        ],
        out_specs=pl.BlockSpec((tq, dp), lambda i, n, k: (i, n)),
        scratch_shapes=[pltpu.VMEM((tq, dp), jnp.float32)],
        compiler_params=pltpu.CompilerParams(
            dimension_semantics=("parallel", "parallel", "arbitrary"),
            vmem_limit_bytes=vmem_limit),
        cost_estimate=proj_cost,
    )(x_p, w_qkv)

    # ---- kernel 2: attention (KV-resident fast path or streaming flash) -------
    kv_bytes = 2 * t_pad * dp * itemsize
    attn_cost = pl.CostEstimate(
        flops=int(4 * t_pad * t_pad * dp),
        transcendentals=int(t_pad * t_pad),
        bytes_accessed=int(itemsize * (t_pad * dp * (1 + 2 * nq) + t_pad * dp)))
    out_shape = jax.ShapeDtypeStruct((t_pad, dp), out_dtype)

    if kv_bytes <= kv_resident_bytes:
        out_p = pl.pallas_call(
            functools.partial(_flash_resident_kernel, kv_len=T, tk=tk,
                              mask_kv=mask_kv, n_chunks=nkv),
            out_shape=out_shape,
            grid=(nq,),
            in_specs=[
                pl.BlockSpec((tq, dp), lambda i: (i, 0)),       # q tile
                pl.BlockSpec((t_pad, dp), lambda i: (0, 1)),    # full K, resident
                pl.BlockSpec((t_pad, dp), lambda i: (0, 2)),    # full V, resident
            ],
            out_specs=pl.BlockSpec((tq, dp), lambda i: (i, 0)),
            compiler_params=pltpu.CompilerParams(
                dimension_semantics=("parallel",),
                vmem_limit_bytes=vmem_limit),
            cost_estimate=attn_cost,
        )(qkv, qkv, qkv)
    else:
        # Streaming flash path. On bandwidth-poor v5-class chips, use a 3-deep
        # pipeline on the k/v streams.
        if _is_v5():
            def kv_spec(role):
                return pl.BlockSpec((tk, dp), lambda i, j, r=role: (j, r),
                                    pipeline_mode=pl.Buffered(3))
        else:
            def kv_spec(role):
                return pl.BlockSpec((tk, dp), lambda i, j, r=role: (j, r))

        out_p = pl.pallas_call(
            functools.partial(_flash_stream_kernel, kv_len=T, tk=tk,
                              mask_kv=mask_kv),
            out_shape=out_shape,
            grid=(nq, nkv),
            in_specs=[
                pl.BlockSpec((tq, dp), lambda i, j: (i, 0)),    # q tile (resident over kv)
                kv_spec(1),                                      # k stream
                kv_spec(2),                                      # v stream
            ],
            out_specs=pl.BlockSpec((tq, dp), lambda i, j: (i, 0)),
            scratch_shapes=[
                pltpu.VMEM((tq, 1), jnp.float32),    # running max m
                pltpu.VMEM((tq, 1), jnp.float32),    # running denom l
                pltpu.VMEM((tq, dp), jnp.float32),   # output accumulator
            ],
            compiler_params=pltpu.CompilerParams(
                dimension_semantics=("parallel", "arbitrary"),
                vmem_limit_bytes=vmem_limit),
            cost_estimate=attn_cost,
        )(qkv, qkv, qkv)

    return out_p[:T, :d_out]


def reference(x, w_query, w_key, w_value):
    q = x @ w_query.T
    k = x @ w_key.T
    v = x @ w_value.T
    scores = q @ k.T
    w = jax.nn.softmax(scores / math.sqrt(k.shape[-1]), axis=-1)
    return w @ v


if __name__ == "__main__":
    def make_inputs(key, T, d_in, d_out):
        kx, kq, kk, kv = jax.random.split(key, 4)
        x = jax.random.normal(kx, (T, d_in), dtype=jnp.float32)
        bound = 1.0 / math.sqrt(d_in)
        wq = jax.random.uniform(kq, (d_out, d_in), jnp.float32, -bound, bound)
        wk = jax.random.uniform(kk, (d_out, d_in), jnp.float32, -bound, bound)
        wv = jax.random.uniform(kv, (d_out, d_in), jnp.float32, -bound, bound)
        return x, wq, wk, wv

    # 1) seq=8, d_in=16, d_out=32 — default bf16 compute, KV-resident path.
    x, wq, wk, wv = make_inputs(jax.random.PRNGKey(0), T=8, d_in=16, d_out=32)
    out = jax.block_until_ready(self_attention_v2(x, wq, wk, wv))
    ref = reference(x, wq, wk, wv)
    assert out.shape == (8, 32)
    assert jnp.allclose(out, ref, atol=2e-2, rtol=2e-2), "mismatch (resident, bf16)"

    # 2) T=13 (not a multiple of 8): kv padding mask + 2 q tiles, resident path.
    x2, wq2, wk2, wv2 = make_inputs(jax.random.PRNGKey(1), T=13, d_in=16, d_out=32)
    out2 = jax.block_until_ready(self_attention_v2(x2, wq2, wk2, wv2))
    ref2 = reference(x2, wq2, wk2, wv2)
    assert out2.shape == (13, 32)
    assert jnp.allclose(out2, ref2, atol=2e-2, rtol=2e-2), "mismatch (resident, padded)"

    # 3) Force the streaming flash path (kv_resident_bytes=0), f32 compute.
    x3, wq3, wk3, wv3 = make_inputs(jax.random.PRNGKey(2), T=40, d_in=24, d_out=48)
    out3 = jax.block_until_ready(
        self_attention_v2(x3, wq3, wk3, wv3,
                          compute_dtype=jnp.float32, kv_resident_bytes=0))
    ref3 = reference(x3, wq3, wk3, wv3)
    assert out3.shape == (40, 48)
    assert jnp.allclose(out3, ref3, atol=1e-3, rtol=1e-3), "mismatch (streaming, f32)"

    print("KERNEL_OK")
</pallas_src>

<mosaic_0001>
module attributes {stable_mosaic.version = 11 : i64} {
  func.func @_qkv_proj_kernel(%arg0: i32, %arg1: i32, %arg2: i32, %arg3: memref<8x16xbf16, #tpu.memory_space<vmem>>, %arg4: memref<16x128xbf16, #tpu.memory_space<vmem>>, %arg5: memref<8x128xbf16, #tpu.memory_space<vmem>>, %arg6: memref<8x128xf32, #tpu.memory_space<vmem>>) attributes {dimension_semantics = [#tpu.dimension_semantics<parallel>, #tpu.dimension_semantics<parallel>, #tpu.dimension_semantics<arbitrary>], iteration_bounds = array<i64: 1, 3, 1>, scalar_prefetch = 0 : i64, scratch_operands = 1 : i64, tpu.core_type = #tpu.core_type<tc>, window_params = [{transform_indices = @transform_0, window_bounds = array<i64: 8, 16>}, {transform_indices = @transform_1, window_bounds = array<i64: 16, 128>}, {transform_indices = @transform_2, window_bounds = array<i64: 8, 128>}]} {
    %c0_i32 = arith.constant 0 : i32
    %0 = arith.cmpi eq, %arg2, %c0_i32 : i32
    %1 = arith.extui %0 : i1 to i32
    %c0_i32_0 = arith.constant 0 : i32
    %2 = arith.cmpi ne, %1, %c0_i32_0 : i32
    scf.if %2 {
      %cst_10 = arith.constant 0.000000e+00 : f32
      %12 = vector.broadcast %cst_10 : f32 to vector<8x128xf32>
      %c0_11 = arith.constant 0 : index
      %c0_12 = arith.constant 0 : index
      %13 = vector.load %arg6[%c0_11, %c0_12] : memref<8x128xf32, #tpu.memory_space<vmem>>, vector<8x128xf32>
      tpu.vector_store %arg6[%c0_11, %c0_12], %12 {strides = array<i32>} : memref<8x128xf32, #tpu.memory_space<vmem>>, vector<8x128xf32>,
    } else {
    }
    %c0 = arith.constant 0 : index
    %c0_1 = arith.constant 0 : index
    %3 = vector.load %arg6[%c0, %c0_1] : memref<8x128xf32, #tpu.memory_space<vmem>>, vector<8x128xf32>
    %c0_2 = arith.constant 0 : index
    %c0_3 = arith.constant 0 : index
    %4 = vector.load %arg3[%c0_2, %c0_3] : memref<8x16xbf16, #tpu.memory_space<vmem>>, vector<8x16xbf16>
    %c0_4 = arith.constant 0 : index
    %c0_5 = arith.constant 0 : index
    %5 = vector.load %arg4[%c0_4, %c0_5] : memref<16x128xbf16, #tpu.memory_space<vmem>>, vector<16x128xbf16>
    %cst = arith.constant dense<0.000000e+00> : vector<8x128xf32>
    %6 = tpu.matmul %4, %5, %cst {dimension_numbers = #tpu.dot_dimension_numbers<[1], [0], [0], [1], [0, 0, 1, 1], [], []>} : vector<8x16xbf16>, vector<16x128xbf16>, vector<8x128xf32> -> vector<8x128xf32>
    %7 = arith.addf %3, %6 : vector<8x128xf32>
    %c0_6 = arith.constant 0 : index
    %c0_7 = arith.constant 0 : index
    %8 = vector.load %arg6[%c0_6, %c0_7] : memref<8x128xf32, #tpu.memory_space<vmem>>, vector<8x128xf32>
    tpu.vector_store %arg6[%c0_6, %c0_7], %7 {strides = array<i32>} : memref<8x128xf32, #tpu.memory_space<vmem>>, vector<8x128xf32>,
    %c0_i32_8 = arith.constant 0 : i32
    %9 = arith.cmpi eq, %arg2, %c0_i32_8 : i32
    %10 = arith.extui %9 : i1 to i32
    %c0_i32_9 = arith.constant 0 : i32
    %11 = arith.cmpi ne, %10, %c0_i32_9 : i32
    scf.if %11 {
      %c0_10 = arith.constant 0 : index
      %c0_11 = arith.constant 0 : index
      %12 = vector.load %arg6[%c0_10, %c0_11] : memref<8x128xf32, #tpu.memory_space<vmem>>, vector<8x128xf32>
      %13 = arith.truncf %12 : vector<8x128xf32> to vector<8x128xbf16>
      %c0_12 = arith.constant 0 : index
      %c0_13 = arith.constant 0 : index
      %14 = vector.load %arg5[%c0_12, %c0_13] : memref<8x128xbf16, #tpu.memory_space<vmem>>, vector<8x128xbf16>
      tpu.vector_store %arg5[%c0_12, %c0_13], %13 {strides = array<i32>} : memref<8x128xbf16, #tpu.memory_space<vmem>>, vector<8x128xbf16>,
    } else {
    }
    return
  }
  func.func @transform_0(%arg0: i32, %arg1: i32, %arg2: i32) -> (i32, i32) {
    %c0_i32 = arith.constant 0 : i32
    return %arg0, %arg2 : i32, i32
  }
  func.func @transform_1(%arg0: i32, %arg1: i32, %arg2: i32) -> (i32, i32) {
    %c0_i32 = arith.constant 0 : i32
    return %arg2, %arg1 : i32, i32
  }
  func.func @transform_2(%arg0: i32, %arg1: i32, %arg2: i32) -> (i32, i32) {
    %c0_i32 = arith.constant 0 : i32
    return %arg0, %arg1 : i32, i32
  }
}

</mosaic_0001>

<bundles_post_ra>
// kernel: tpu_custom_call.1
= control target key start
LH: loop header
LB: loop body
LE: loop exit
PB: predicated region body
PF: predicated region fallthrough
CT: control target
= control target key end

     0   :  { %s788_s0 = inlined_call_operand.hbm [shape: bf16[8,16], index: 0, kind: input, shape index: {}]   ;;  %s789_s1 = inlined_call_operand.hbm [shape: bf16[16,384], index: 1, kind: input, shape index: {}]   ;;  %s790_s2 = inlined_call_operand.hbm [shape: bf16[8,384], index: 2, kind: output, shape index: {}]  }
   0x1   :  { %791 = sst [smem:[#allocation12_spill]] %s788_s0 }
   0x2   :  { %7 = vsyncpa [#allocation4], 0 }
   0x3   :  { %8 = vsyncpa [#allocation7], 0 }
   0x4   :  { %10 = vsyncpa [#allocation7 + $0x1], 0 }
   0x5   :  { %11 = vsyncpa [#allocation5], 0 }
   0x6   :  { %13 = vsyncpa [#allocation5 + $0x1], 0  ;;  %s638_s9 = smov 0   ;;  %s640_s10 = smov 0  }
   0x7   :  { %s642_s11 = smov 0   ;;  %s644_s12 = smov 0  }
   0x8   :  { %s646_s13 = smov 0   ;;  %s648_s14 = smov 0  }
   0x9 LB: > { %s374_s15 = sadd.s32 4294967295, %s617_s14   ;;  %s375_s16 = sadd.s32 4294967294, %s617_s14   ;;  %s617_s14 = sphi %s648_s14, %s19_s14   ;;  %s613_s13 = sphi %s646_s13, %s804_s13   ;;  %s609_s12 = sphi %s644_s12, %s803_s12   ;;  %s605_s11 = sphi %s642_s11, %s802_s11   ;;  %s601_s10 = sphi %s640_s10, %s801_s10   ;;  %s597_s9 = sphi %s638_s9, %s800_s9  }
   0xa   : > { %s75_s17 = sadd.s32 1, %s605_s11  ;;  %p82_p0 = scmp.ne.s32.totalorder %s605_s11, %s601_s10 }
   0xb   : > { %p83_p1 = scmp.eq.s32.totalorder %s617_s14, 0  ;;  %p88_p2 = scmp.ne.s32.totalorder %s601_s10, %s597_s9 }
   0xc   : > { %p676_p3 = scmp.eq.s32.totalorder %s374_s15, 0  ;;  %p114_p4 = scmp.eq.s32.totalorder %s374_s15, 2 }
   0xd   : > { %p680_p5 = por %p83_p1, %p82_p0  ;;  %p120_p6 = scmp.eq.s32.totalorder %s375_s16, 2 }
   0xe   : > { %p686_p7 = por %p676_p3, %p88_p2  ;;  %p690_p8 = por %p114_p4, %p82_p0 }
   0xf   : > { %p694_p9 = por %p120_p6, %p88_p2  ;;  %p376_p10 = scmp.ge.s32.totalorder %s617_s14, 1 }
  0x10   : > { %p127_p11 = scmp.lt.s32.totalorder %s617_s14, 4  ;;  %s797_s0 = sld [smem:[#allocation12_spill]] }
  0x11   : > { %s619_s27 = smov [#allocation3]   ;;  %p416_p0 = scmp.lt.s32.totalorder %s617_s14, 3 }
  0x12   : > { %p703_p12 = pnand %p376_p10, %p127_p11  ;;  %s144_s28 = sshll.u32 %s619_s27, 4  ;;  %s145_s28 = int_to_ptr.vmem [resolvable:$true] %s144_s28 }
  0x13   : > { %p714_p2 = pnand %p416_p0, %p680_p5  ;;  %s34_s30 = sadd.s32 1, %s613_s13 }
  0x14   : > { %p403_p13 = pneg %p703_p12  ;;  %p36_p4 = scmp.ge.s32.totalorder %s34_s30, 3 }
  0x15   : > { %s155_s3 = sand.u32 1, %s605_s11   ;;  %s380_s6 = sshll.u32 %s613_s13, 2 }
  0x16   : > { %s142_s25 = sshll.u32 %s797_s0, 4  ;;  %p404_p1 = pnand %p403_p13, %p676_p3  ;;  %s143_s25 = int_to_ptr.hbm [resolvable:$true] %s142_s25 }
  0x17   : > { %s806_s30 = smov (%p36_p4, %s34_s30), 0  ;;  %s379_s4 = sshll.u32 %s155_s3, 3 }
  0x18   : > { %406 = dma.hbm_to_vmem [thread:$0]  (!%p404_p1), %s143_s25, 64, %s145_s28, [#allocation4]  }
  0x19   : > { %s71_s5 = ssub.s32 %s613_s13, %s806_s30  ;;  %s166_s15 = scalar_lea.hbm %s789_s1, %s380_s6 }
  0x1a   : > { %p73_p6 = scmp.eq.s32.totalorder %s71_s5, 0  ;;  %s159_s16 = scalar_lea.vmem [#allocation6], %s379_s4 }
  0x1b   : > { %s169_s19 = sshll.u32 %s159_s16, 4  ;;  %s167_s24 = sshll.u32 %s166_s15, 4  ;;  %s170_s19 = int_to_ptr.vmem [resolvable:$true] %s169_s19  ;;  %s168_s24 = int_to_ptr.hbm [resolvable:$true] %s167_s24 }
  0x1c   : > { %s731_s23 = scalar_select %p73_p6, %s605_s11, %s75_s17  }
  0x1d   : > { %s156_s25 = scalar_lea.sflag [#allocation7], %s155_s3  ;;  %s620_s27 = smov 192  }
  0x1e   : > { %s621_s28 = smov 64   ;;  %s622_s0 = smov 4  }
  0x1f   : > { %410 = dma.hbm_to_vmem [thread:$0]  (!%p714_p2), %s168_s24, 128, %s170_s19, %s156_s25, %s620_s27, %s621_s28, %s622_s0  }
  0x20   : > { %181 = sbr.rel (%p703_p12) target bundleno = 180 (0xb4), region = 28 }
  0x25   : > { %584 = dma.done.wait (%p676_p3), [#allocation4], 64  }
  0x26   : > { %586 = vsyncadd (%p676_p3), [#allocation4], 4294967232  ;;  %s742_s17 = sand.u32 1, %s601_s10  }
  0x27   : > { %s383_s3 = sshll.u32 %s742_s17, 3  ;;  %s189_s4 = scalar_lea.sflag [#allocation7], %s742_s17 }
  0x28   : > { %s192_s5 = scalar_lea.vmem [#allocation6], %s383_s3 }
  0x29   : > { %588 = dma.done.wait (%p686_p7), %s189_s4, 128  }
  0x2a   : > { %590 = vsyncadd (%p686_p7), %s189_s4, 4294967168  ;;  %v394_v0 = vld [vmem:[%s192_s5] sm:$0xff]  ;;  %v222_v1 = vld [vmem:[#allocation3] sm:$0xf]  ;;  %vm231_vm0 = vcmask 130048   ;;  %s391_s0 = sshll.u32 %s609_s12, 2 }
  0x2b   : > { %242 = vmatpush.bf16.msra.mxu0 %v394_v0  ;;  %s384_s18 = sshll.u32 %s742_s17, 2  ;;  %s269_s6 = scalar_lea.hbm %s790_s2, %s391_s0 }
  0x2c   : > { %s213_s7 = scalar_lea.vmem [#allocation8], %s384_s18  ;;  %s273_s15 = sshll.u32 %s269_s6, 4  ;;  %s274_s15 = int_to_ptr.hbm [resolvable:$true] %s273_s15 }
  0x2d   : > { %s271_s8 = sshll.u32 %s213_s7, 4  ;;  %s257_s20 = scalar_lea.sflag [#allocation5], %s742_s17  ;;  %s272_s8 = int_to_ptr.vmem [resolvable:$true] %s271_s8 }
  0x2e   : > { %389 = vmatmul.msk.bf16.vlgmr.msra.gmra.mxu0 %vm231_vm0, %v222_v1  ;;  %s545_s16 = sshra.s32 %s274_s15, 4  ;;  %s551_s25 = scalar_lea.hbm %s790_s2, 12  ;;  %s546_s16 = int_to_ptr.hbm [resolvable:$true] %s545_s16 }
  0x2f   : > { %s547_s19 = scalar_lea.hbm %s546_s16, 4  ;;  %p552_p10 = scmp.lt.s32.totalorder %s546_s16, %s790_s2 }
  0x30   : > { %p548_p3 = scmp.ne.s32.totalorder %s546_s16, %s547_s19  ;;  %p553_p11 = scmp.lt.s32.totalorder %s551_s25, %s547_s19 }
  0x32   : > { %p549_p5 = pnand %p548_p3, %p690_p8  ;;  %p554_p12 = por %p553_p11, %p552_p10 }
  0x34   : > { %p550_p7 = pneg %p549_p5 }
  0x36   : > { %p555_p13 = pnand %p554_p12, %p550_p7 }
  0xab   : > { %v244_v2 = vpop.f32.mrf.mxu0 }
  0xac   : > { %v254_v3 = vpack.c.bf16 %v244_v2, %v244_v2 }
  0xae   : > { %255 = vst [vmem:[%s213_s7] sm:$0xf] %v254_v3 }
  0xaf   : > { %558 = shalt.err (!%p555_p13)
}
  0xb0   : > { %401 = dma.vmem_to_hbm [thread:$0]  (%p690_p8), %s272_s8, 64, %s274_s15, %s257_s20  }
  0xb3   : > { %v246_v4 = vpop.f32.mrf.mxu0 }
  0xb4 PF: > { %p418_p0 = scmp.ge.s32.totalorder %s617_s14, 2  ;;  %s285_s17 = sand.u32 1, %s597_s9  }
  0xb5   : > { %s286_s3 = scalar_lea.sflag [#allocation5], %s285_s17 }
  0xb6   : > { %p412_p1 = pnand %p418_p0, %p694_p9 }
  0xb8   : > { %p413_p2 = pneg %p412_p1 }
  0xba   : > { %592 = dma.done.wait (%p413_p2), %s286_s3, 64  }
  0xbb   : > { %594 = vsyncadd (%p413_p2), %s286_s3, 4294967232  ;;  %s19_s14 = sadd.s32 1, %s617_s14   ;;  %s800_s9 = smov %s601_s10 }
  0xbc   : > { %p16_p4 = scmp.ge.s32.totalorder %s19_s14, 5   ;;  %s801_s10 = smov %s605_s11 }
  0xbd   : > { %s802_s11 = smov %s731_s23  ;;  %s803_s12 = smov %s613_s13 }
  0xbe   : > { %s804_s13 = smov %s806_s30  ;;  %18 = sbr.rel (!%p16_p4) target bundleno = 9 (0x9), region = 87 }
  0xc3   :  { %292 = vsyncpa [#allocation4], 1 }
  0xc4   :  { %294 = vsyncpa [#allocation4 + $0x1], 1 }
  0xc5   :  { %295 = vsyncpa [#allocation7], 1 }
  0xc6   :  { %297 = vsyncpa [#allocation7 + $0x1], 1 }
  0xc7   :  { %298 = vsyncpa [#allocation5], 1 }
  0xc8   :  { %300 = vsyncpa [#allocation5 + $0x1], 1 }

</bundles_post_ra>
